<compile_context>
chip_gen: v5e
topology: v5e:2x2
jax: 0.10.0
libtpu: 0.0.40
codegen_flags: <defaults>
</compile_context>

<pallas_src>
import functools
import math

import jax
import jax.numpy as jnp
from jax.experimental import pallas as pl
from jax.experimental.pallas import tpu as pltpu

_LANE = 128      # f32 lane width
_SUBLANE = 8     # f32 sublane count


def _round_up(n: int, m: int) -> int:
    return ((n + m - 1) // m) * m


# ---------------------------------------------------------------------------
# Fused forward kernel
# ---------------------------------------------------------------------------

def _masked_log_softmax(x, valid: int):
    """Row-wise log_softmax over the first `valid` columns of a padded block."""
    d = x.shape[-1]
    if valid < d:
        col = jax.lax.broadcasted_iota(jnp.int32, x.shape, 1)
        x = jnp.where(col < valid, x, -jnp.inf)
    m = jnp.max(x, axis=-1, keepdims=True)            # finite: valid >= 1 col
    z = x - m
    lse = jnp.log(jnp.sum(jnp.exp(z), axis=-1, keepdims=True))
    return z - lse                                     # padded cols -> -inf


def _fused_forward_kernel(x_ref, *refs,
                          n_in: int, n_v: int, n_pi: int,
                          pi_valid: int, v_valid: int):
    # refs layout: [w,b]*n_in  [w,b]*n_v  [w,b]*n_pi  pi_out_ref  v_out_ref
    n_params = 2 * (n_in + n_v + n_pi)
    p = refs[:n_params]
    pi_out_ref = refs[n_params]
    v_out_ref = refs[n_params + 1]

    def pairs(off, count):
        return [(p[off + 2 * i], p[off + 2 * i + 1]) for i in range(count)]

    in_layers = pairs(0, n_in)
    v_layers = pairs(2 * n_in, n_v)
    pi_layers = pairs(2 * (n_in + n_v), n_pi)

    # input_fc: ReLU on every Linear except the last (output_activation=Identity)
    x = x_ref[...].astype(jnp.float32)
    for i, (w_ref, b_ref) in enumerate(in_layers):
        x = jnp.dot(x, w_ref[...], preferred_element_type=jnp.float32) + b_ref[...]
        if i < n_in - 1:
            x = jnp.maximum(x, 0.0)

    # v_fc / pi_fc built with activation=nn.Identity -> pure linear stacks,
    # both heads read the same x already resident in vregs.
    v = x
    for (w_ref, b_ref) in v_layers:
        v = jnp.dot(v, w_ref[...], preferred_element_type=jnp.float32) + b_ref[...]

    pi = x
    for (w_ref, b_ref) in pi_layers:
        pi = jnp.dot(pi, w_ref[...], preferred_element_type=jnp.float32) + b_ref[...]

    pi_out_ref[...] = _masked_log_softmax(pi, pi_valid).astype(pi_out_ref.dtype)
    v_out_ref[...] = _masked_log_softmax(v, v_valid).astype(v_out_ref.dtype)


# ---------------------------------------------------------------------------
# Parameter construction (PyTorch-Linear-style uniform init, lane-padded)
# ---------------------------------------------------------------------------

def _init_linear(key, fan_in, fan_out, in_pad, out_pad):
    kw, kb = jax.random.split(key)
    bound = 1.0 / math.sqrt(fan_in)
    w = jax.random.uniform(kw, (fan_in, fan_out), jnp.float32, -bound, bound)
    b = jax.random.uniform(kb, (fan_out,), jnp.float32, -bound, bound)
    # Zero padding keeps the math identical and padded activation columns zero.
    w_pad = jnp.zeros((in_pad, out_pad), jnp.float32).at[:fan_in, :fan_out].set(w)
    b_pad = jnp.zeros((1, out_pad), jnp.float32).at[0, :fan_out].set(b)
    return w_pad, b_pad


def init_fully_connected(key, input_size, input_fc_layers,
                         value_dense_layers, policy_dense_layers,
                         value_out, action_size):
    # Exactly how the PyTorch module builds its mlps:
    #   input_fc: mlp(input_size, input_fc_layers, input_fc_layers[-1], ReLU)
    #   -> sizes = [input_size] + layers + [layers[-1]] (trailing duplicate is intended)
    input_sizes = [input_size] + list(input_fc_layers) + [input_fc_layers[-1]]
    v_sizes = [input_fc_layers[-1]] + list(value_dense_layers) + [value_out]
    pi_sizes = [input_fc_layers[-1]] + list(policy_dense_layers) + [action_size]

    def build(key, sizes):
        padded = [_round_up(s, _LANE) for s in sizes]
        layers = []
        for i in range(len(sizes) - 1):
            key, sub = jax.random.split(key)
            layers.append(_init_linear(sub, sizes[i], sizes[i + 1],
                                       padded[i], padded[i + 1]))
        return layers, key

    in_layers, key = build(key, input_sizes)
    v_layers, key = build(key, v_sizes)
    pi_layers, key = build(key, pi_sizes)

    meta = dict(
        in_pad=_round_up(input_size, _LANE),
        pi_pad=_round_up(action_size, _LANE),
        v_pad=_round_up(value_out, _LANE),
        action_size=action_size,
        value_out=value_out,
    )
    return (in_layers, v_layers, pi_layers, meta)


# ---------------------------------------------------------------------------
# Forward pass (mirrors FullyConnected.forward)
# ---------------------------------------------------------------------------

def fully_connected_forward(params, s):
    in_layers, v_layers, pi_layers, meta = params
    in_pad, pi_pad, v_pad = meta["in_pad"], meta["pi_pad"], meta["v_pad"]
    pi_valid, v_valid = meta["action_size"], meta["value_out"]

    B = s.shape[0]
    x = s.reshape(B, -1).astype(jnp.float32)          # s.view(-1, input_size)
    in_size = x.shape[1]

    # Sublane-pad batch; pick a batch tile (parallel grid axis for v7x 2x TC).
    tb = 128 if B > 128 else _round_up(B, _SUBLANE)
    B_pad = _round_up(B, tb)
    x = jnp.pad(x, ((0, B_pad - B), (0, in_pad - in_size)))

    flat_params = []
    for (w, b) in in_layers + v_layers + pi_layers:
        flat_params += [w, b]
    n_in, n_v, n_pi = len(in_layers), len(v_layers), len(pi_layers)

    kernel = functools.partial(
        _fused_forward_kernel, n_in=n_in, n_v=n_v, n_pi=n_pi,
        pi_valid=pi_valid, v_valid=v_valid)

    grid = (B_pad // tb,)
    x_spec = pl.BlockSpec((tb, in_pad), lambda i: (i, 0))
    param_specs = [pl.BlockSpec(a.shape, lambda i: (0, 0)) for a in flat_params]
    out_specs = [pl.BlockSpec((tb, pi_pad), lambda i: (i, 0)),
                 pl.BlockSpec((tb, v_pad), lambda i: (i, 0))]

    log_pi_pad, log_v_pad = pl.pallas_call(
        kernel,
        out_shape=(jax.ShapeDtypeStruct((B_pad, pi_pad), jnp.float32),
                   jax.ShapeDtypeStruct((B_pad, v_pad), jnp.float32)),
        grid=grid,
        in_specs=[x_spec] + param_specs,
        out_specs=out_specs,
        compiler_params=pltpu.CompilerParams(
            dimension_semantics=("parallel",)),
    )(x, *flat_params)

    return log_pi_pad[:B, :pi_valid], log_v_pad[:B, :v_valid]


# ---------------------------------------------------------------------------
# Pure-JAX reference (for correctness check only)
# ---------------------------------------------------------------------------

def _reference_forward(params, s):
    in_layers, v_layers, pi_layers, meta = params
    B = s.shape[0]
    x = s.reshape(B, -1).astype(jnp.float32)
    x = jnp.pad(x, ((0, 0), (0, meta["in_pad"] - x.shape[1])))
    for i, (w, b) in enumerate(in_layers):
        x = x @ w + b
        if i < len(in_layers) - 1:
            x = jnp.maximum(x, 0.0)
    v = x
    for (w, b) in v_layers:
        v = v @ w + b
    pi = x
    for (w, b) in pi_layers:
        pi = pi @ w + b
    pi = pi[:, :meta["action_size"]]
    v = v[:, :meta["value_out"]]
    return jax.nn.log_softmax(pi, axis=1), jax.nn.log_softmax(v, axis=1)


# ---------------------------------------------------------------------------
# Demo
# ---------------------------------------------------------------------------

if __name__ == "__main__":
    # Synthetic game/args configuration (small shapes):
    #   observation_size = (4, 8, 8)  -> input_size = 256
    #   input_fc_layers  = [64, 32]
    #   value_dense_layers = [16], policy_dense_layers = [16]
    #   num_players = 2, has_draw = 1 -> value head output = 3
    #   action_size = 65
    batch = 2
    obs_shape = (4, 8, 8)
    input_size = math.prod(obs_shape)
    input_fc_layers = [64, 32]
    value_dense_layers = [16]
    policy_dense_layers = [16]
    num_players, has_draw = 2, 1
    action_size = 65
    value_out = num_players + has_draw

    key = jax.random.PRNGKey(0)
    key, pkey, xkey = jax.random.split(key, 3)

    params = init_fully_connected(
        pkey, input_size, input_fc_layers,
        value_dense_layers, policy_dense_layers,
        value_out=value_out, action_size=action_size)

    s = jax.random.normal(xkey, (batch,) + obs_shape, dtype=jnp.float32)

    log_pi, log_v = fully_connected_forward(params, s)
    jax.block_until_ready((log_pi, log_v))

    assert log_pi.shape == (batch, action_size)
    assert log_v.shape == (batch, value_out)
    # log_softmax rows must exp-sum to ~1
    assert jnp.allclose(jnp.sum(jnp.exp(log_pi), axis=1), 1.0, atol=1e-4)
    assert jnp.allclose(jnp.sum(jnp.exp(log_v), axis=1), 1.0, atol=1e-4)

    # Match the pure-JAX reference forward pass.
    ref_pi, ref_v = _reference_forward(params, s)
    assert jnp.allclose(log_pi, ref_pi, atol=1e-3, rtol=1e-3)
    assert jnp.allclose(log_v, ref_v, atol=1e-3, rtol=1e-3)

    print("KERNEL_OK")
</pallas_src>

<mosaic_0001>
module attributes {stable_mosaic.version = 11 : i64} {
  func.func @_fused_forward_kernel(%arg0: i32, %arg1: memref<8x256xf32, #tpu.memory_space<vmem>>, %arg2: memref<256x128xf32, #tpu.memory_space<vmem>>, %arg3: memref<1x128xf32, #tpu.memory_space<vmem>>, %arg4: memref<128x128xf32, #tpu.memory_space<vmem>>, %arg5: memref<1x128xf32, #tpu.memory_space<vmem>>, %arg6: memref<128x128xf32, #tpu.memory_space<vmem>>, %arg7: memref<1x128xf32, #tpu.memory_space<vmem>>, %arg8: memref<128x128xf32, #tpu.memory_space<vmem>>, %arg9: memref<1x128xf32, #tpu.memory_space<vmem>>, %arg10: memref<128x128xf32, #tpu.memory_space<vmem>>, %arg11: memref<1x128xf32, #tpu.memory_space<vmem>>, %arg12: memref<128x128xf32, #tpu.memory_space<vmem>>, %arg13: memref<1x128xf32, #tpu.memory_space<vmem>>, %arg14: memref<128x128xf32, #tpu.memory_space<vmem>>, %arg15: memref<1x128xf32, #tpu.memory_space<vmem>>, %arg16: memref<8x128xf32, #tpu.memory_space<vmem>>, %arg17: memref<8x128xf32, #tpu.memory_space<vmem>>) attributes {dimension_semantics = [#tpu.dimension_semantics<parallel>], iteration_bounds = array<i64: 1>, scalar_prefetch = 0 : i64, scratch_operands = 0 : i64, tpu.core_type = #tpu.core_type<tc>, window_params = [{transform_indices = @transform_0, window_bounds = array<i64: 8, 256>}, {pipeline_mode = #tpu.pipeline_mode<synchronous>, transform_indices = @transform_1, window_bounds = array<i64: 256, 128>}, {pipeline_mode = #tpu.pipeline_mode<synchronous>, transform_indices = @transform_2, window_bounds = array<i64: 1, 128>}, {pipeline_mode = #tpu.pipeline_mode<synchronous>, transform_indices = @transform_3, window_bounds = array<i64: 128, 128>}, {pipeline_mode = #tpu.pipeline_mode<synchronous>, transform_indices = @transform_4, window_bounds = array<i64: 1, 128>}, {pipeline_mode = #tpu.pipeline_mode<synchronous>, transform_indices = @transform_5, window_bounds = array<i64: 128, 128>}, {pipeline_mode = #tpu.pipeline_mode<synchronous>, transform_indices = @transform_6, window_bounds = array<i64: 1, 128>}, {pipeline_mode = #tpu.pipeline_mode<synchronous>, transform_indices = @transform_7, window_bounds = array<i64: 128, 128>}, {pipeline_mode = #tpu.pipeline_mode<synchronous>, transform_indices = @transform_8, window_bounds = array<i64: 1, 128>}, {pipeline_mode = #tpu.pipeline_mode<synchronous>, transform_indices = @transform_9, window_bounds = array<i64: 128, 128>}, {pipeline_mode = #tpu.pipeline_mode<synchronous>, transform_indices = @transform_10, window_bounds = array<i64: 1, 128>}, {pipeline_mode = #tpu.pipeline_mode<synchronous>, transform_indices = @transform_11, window_bounds = array<i64: 128, 128>}, {pipeline_mode = #tpu.pipeline_mode<synchronous>, transform_indices = @transform_12, window_bounds = array<i64: 1, 128>}, {pipeline_mode = #tpu.pipeline_mode<synchronous>, transform_indices = @transform_13, window_bounds = array<i64: 128, 128>}, {pipeline_mode = #tpu.pipeline_mode<synchronous>, transform_indices = @transform_14, window_bounds = array<i64: 1, 128>}, {transform_indices = @transform_15, window_bounds = array<i64: 8, 128>}, {transform_indices = @transform_16, window_bounds = array<i64: 8, 128>}]} {
    %c0 = arith.constant 0 : index
    %c0_0 = arith.constant 0 : index
    %0 = vector.load %arg1[%c0, %c0_0] : memref<8x256xf32, #tpu.memory_space<vmem>>, vector<8x256xf32>
    %c0_1 = arith.constant 0 : index
    %c0_2 = arith.constant 0 : index
    %1 = vector.load %arg2[%c0_1, %c0_2] : memref<256x128xf32, #tpu.memory_space<vmem>>, vector<256x128xf32>
    %cst = arith.constant dense<0.000000e+00> : vector<8x128xf32>
    %2 = tpu.matmul %0, %1, %cst {dimension_numbers = #tpu.dot_dimension_numbers<[1], [0], [0], [1], [0, 0, 1, 1], [], []>} : vector<8x256xf32>, vector<256x128xf32>, vector<8x128xf32> -> vector<8x128xf32>
    %c0_3 = arith.constant 0 : index
    %c0_4 = arith.constant 0 : index
    %3 = vector.load %arg3[%c0_3, %c0_4] : memref<1x128xf32, #tpu.memory_space<vmem>>, vector<1x128xf32>
    %4 = vector.broadcast %3 : vector<1x128xf32> to vector<8x128xf32>
    %5 = arith.addf %2, %4 : vector<8x128xf32>
    %cst_5 = arith.constant 0.000000e+00 : f32
    %6 = vector.broadcast %cst_5 : f32 to vector<8x128xf32>
    %7 = arith.maximumf %5, %6 : vector<8x128xf32>
    %c0_6 = arith.constant 0 : index
    %c0_7 = arith.constant 0 : index
    %8 = vector.load %arg4[%c0_6, %c0_7] : memref<128x128xf32, #tpu.memory_space<vmem>>, vector<128x128xf32>
    %cst_8 = arith.constant dense<0.000000e+00> : vector<8x128xf32>
    %9 = tpu.matmul %7, %8, %cst_8 {dimension_numbers = #tpu.dot_dimension_numbers<[1], [0], [0], [1], [0, 0, 1, 1], [], []>} : vector<8x128xf32>, vector<128x128xf32>, vector<8x128xf32> -> vector<8x128xf32>
    %c0_9 = arith.constant 0 : index
    %c0_10 = arith.constant 0 : index
    %10 = vector.load %arg5[%c0_9, %c0_10] : memref<1x128xf32, #tpu.memory_space<vmem>>, vector<1x128xf32>
    %11 = vector.broadcast %10 : vector<1x128xf32> to vector<8x128xf32>
    %12 = arith.addf %9, %11 : vector<8x128xf32>
    %cst_11 = arith.constant 0.000000e+00 : f32
    %13 = vector.broadcast %cst_11 : f32 to vector<8x128xf32>
    %14 = arith.maximumf %12, %13 : vector<8x128xf32>
    %c0_12 = arith.constant 0 : index
    %c0_13 = arith.constant 0 : index
    %15 = vector.load %arg6[%c0_12, %c0_13] : memref<128x128xf32, #tpu.memory_space<vmem>>, vector<128x128xf32>
    %cst_14 = arith.constant dense<0.000000e+00> : vector<8x128xf32>
    %16 = tpu.matmul %14, %15, %cst_14 {dimension_numbers = #tpu.dot_dimension_numbers<[1], [0], [0], [1], [0, 0, 1, 1], [], []>} : vector<8x128xf32>, vector<128x128xf32>, vector<8x128xf32> -> vector<8x128xf32>
    %c0_15 = arith.constant 0 : index
    %c0_16 = arith.constant 0 : index
    %17 = vector.load %arg7[%c0_15, %c0_16] : memref<1x128xf32, #tpu.memory_space<vmem>>, vector<1x128xf32>
    %18 = vector.broadcast %17 : vector<1x128xf32> to vector<8x128xf32>
    %19 = arith.addf %16, %18 : vector<8x128xf32>
    %c0_17 = arith.constant 0 : index
    %c0_18 = arith.constant 0 : index
    %20 = vector.load %arg8[%c0_17, %c0_18] : memref<128x128xf32, #tpu.memory_space<vmem>>, vector<128x128xf32>
    %cst_19 = arith.constant dense<0.000000e+00> : vector<8x128xf32>
    %21 = tpu.matmul %19, %20, %cst_19 {dimension_numbers = #tpu.dot_dimension_numbers<[1], [0], [0], [1], [0, 0, 1, 1], [], []>} : vector<8x128xf32>, vector<128x128xf32>, vector<8x128xf32> -> vector<8x128xf32>
    %c0_20 = arith.constant 0 : index
    %c0_21 = arith.constant 0 : index
    %22 = vector.load %arg9[%c0_20, %c0_21] : memref<1x128xf32, #tpu.memory_space<vmem>>, vector<1x128xf32>
    %23 = vector.broadcast %22 : vector<1x128xf32> to vector<8x128xf32>
    %24 = arith.addf %21, %23 : vector<8x128xf32>
    %c0_22 = arith.constant 0 : index
    %c0_23 = arith.constant 0 : index
    %25 = vector.load %arg10[%c0_22, %c0_23] : memref<128x128xf32, #tpu.memory_space<vmem>>, vector<128x128xf32>
    %cst_24 = arith.constant dense<0.000000e+00> : vector<8x128xf32>
    %26 = tpu.matmul %24, %25, %cst_24 {dimension_numbers = #tpu.dot_dimension_numbers<[1], [0], [0], [1], [0, 0, 1, 1], [], []>} : vector<8x128xf32>, vector<128x128xf32>, vector<8x128xf32> -> vector<8x128xf32>
    %c0_25 = arith.constant 0 : index
    %c0_26 = arith.constant 0 : index
    %27 = vector.load %arg11[%c0_25, %c0_26] : memref<1x128xf32, #tpu.memory_space<vmem>>, vector<1x128xf32>
    %28 = vector.broadcast %27 : vector<1x128xf32> to vector<8x128xf32>
    %29 = arith.addf %26, %28 : vector<8x128xf32>
    %c0_27 = arith.constant 0 : index
    %c0_28 = arith.constant 0 : index
    %30 = vector.load %arg12[%c0_27, %c0_28] : memref<128x128xf32, #tpu.memory_space<vmem>>, vector<128x128xf32>
    %cst_29 = arith.constant dense<0.000000e+00> : vector<8x128xf32>
    %31 = tpu.matmul %19, %30, %cst_29 {dimension_numbers = #tpu.dot_dimension_numbers<[1], [0], [0], [1], [0, 0, 1, 1], [], []>} : vector<8x128xf32>, vector<128x128xf32>, vector<8x128xf32> -> vector<8x128xf32>
    %c0_30 = arith.constant 0 : index
    %c0_31 = arith.constant 0 : index
    %32 = vector.load %arg13[%c0_30, %c0_31] : memref<1x128xf32, #tpu.memory_space<vmem>>, vector<1x128xf32>
    %33 = vector.broadcast %32 : vector<1x128xf32> to vector<8x128xf32>
    %34 = arith.addf %31, %33 : vector<8x128xf32>
    %c0_32 = arith.constant 0 : index
    %c0_33 = arith.constant 0 : index
    %35 = vector.load %arg14[%c0_32, %c0_33] : memref<128x128xf32, #tpu.memory_space<vmem>>, vector<128x128xf32>
    %cst_34 = arith.constant dense<0.000000e+00> : vector<8x128xf32>
    %36 = tpu.matmul %34, %35, %cst_34 {dimension_numbers = #tpu.dot_dimension_numbers<[1], [0], [0], [1], [0, 0, 1, 1], [], []>} : vector<8x128xf32>, vector<128x128xf32>, vector<8x128xf32> -> vector<8x128xf32>
    %c0_35 = arith.constant 0 : index
    %c0_36 = arith.constant 0 : index
    %37 = vector.load %arg15[%c0_35, %c0_36] : memref<1x128xf32, #tpu.memory_space<vmem>>, vector<1x128xf32>
    %38 = vector.broadcast %37 : vector<1x128xf32> to vector<8x128xf32>
    %39 = arith.addf %36, %38 : vector<8x128xf32>
    %40 = tpu.iota {dimensions = array<i32: 1>} : vector<8x128xi32>
    %c65_i32 = arith.constant 65 : i32
    %41 = vector.broadcast %c65_i32 : i32 to vector<8x128xi32>
    %42 = arith.cmpi slt, %40, %41 : vector<8x128xi32>
    %cst_37 = arith.constant 0xFF800000 : f32
    %43 = vector.broadcast %cst_37 : f32 to vector<8x128xf32>
    %44 = arith.select %42, %39, %43 : vector<8x128xi1>, vector<8x128xf32>
    %cst_38 = arith.constant dense<0xFF800000> : vector<8xf32>
    %45 = vector.multi_reduction <maximumf>, %44, %cst_38 [1] : vector<8x128xf32> to vector<8xf32>
    %46 = vector.shape_cast %45 : vector<8xf32> to vector<8x1xf32>
    %47 = vector.broadcast %46 : vector<8x1xf32> to vector<8x128xf32>
    %48 = arith.subf %44, %47 : vector<8x128xf32>
    %49 = math.exp %48 : vector<8x128xf32>
    %cst_39 = arith.constant dense<0.000000e+00> : vector<8xf32>
    %50 = vector.multi_reduction <add>, %49, %cst_39 [1] : vector<8x128xf32> to vector<8xf32>
    %51 = vector.shape_cast %50 : vector<8xf32> to vector<8x1xf32>
    %52 = math.log %51 : vector<8x1xf32>
    %53 = vector.broadcast %52 : vector<8x1xf32> to vector<8x128xf32>
    %54 = arith.subf %48, %53 : vector<8x128xf32>
    %c0_40 = arith.constant 0 : index
    %c0_41 = arith.constant 0 : index
    %55 = vector.load %arg16[%c0_40, %c0_41] : memref<8x128xf32, #tpu.memory_space<vmem>>, vector<8x128xf32>
    tpu.vector_store %arg16[%c0_40, %c0_41], %54 {strides = array<i32>} : memref<8x128xf32, #tpu.memory_space<vmem>>, vector<8x128xf32>,
    %56 = tpu.iota {dimensions = array<i32: 1>} : vector<8x128xi32>
    %c3_i32 = arith.constant 3 : i32
    %57 = vector.broadcast %c3_i32 : i32 to vector<8x128xi32>
    %58 = arith.cmpi slt, %56, %57 : vector<8x128xi32>
    %cst_42 = arith.constant 0xFF800000 : f32
    %59 = vector.broadcast %cst_42 : f32 to vector<8x128xf32>
    %60 = arith.select %58, %29, %59 : vector<8x128xi1>, vector<8x128xf32>
    %cst_43 = arith.constant dense<0xFF800000> : vector<8xf32>
    %61 = vector.multi_reduction <maximumf>, %60, %cst_43 [1] : vector<8x128xf32> to vector<8xf32>
    %62 = vector.shape_cast %61 : vector<8xf32> to vector<8x1xf32>
    %63 = vector.broadcast %62 : vector<8x1xf32> to vector<8x128xf32>
    %64 = arith.subf %60, %63 : vector<8x128xf32>
    %65 = math.exp %64 : vector<8x128xf32>
    %cst_44 = arith.constant dense<0.000000e+00> : vector<8xf32>
    %66 = vector.multi_reduction <add>, %65, %cst_44 [1] : vector<8x128xf32> to vector<8xf32>
    %67 = vector.shape_cast %66 : vector<8xf32> to vector<8x1xf32>
    %68 = math.log %67 : vector<8x1xf32>
    %69 = vector.broadcast %68 : vector<8x1xf32> to vector<8x128xf32>
    %70 = arith.subf %64, %69 : vector<8x128xf32>
    %c0_45 = arith.constant 0 : index
    %c0_46 = arith.constant 0 : index
    %71 = vector.load %arg17[%c0_45, %c0_46] : memref<8x128xf32, #tpu.memory_space<vmem>>, vector<8x128xf32>
    tpu.vector_store %arg17[%c0_45, %c0_46], %70 {strides = array<i32>} : memref<8x128xf32, #tpu.memory_space<vmem>>, vector<8x128xf32>,
    return
  }
  func.func @transform_0(%arg0: i32) -> (i32, i32) {
    %c0_i32 = arith.constant 0 : i32
    %c0_i32_0 = arith.constant 0 : i32
    return %arg0, %c0_i32 : i32, i32
  }
  func.func @transform_1(%arg0: i32) -> (i32, i32) {
    %c0_i32 = arith.constant 0 : i32
    %c0_i32_0 = arith.constant 0 : i32
    %c0_i32_1 = arith.constant 0 : i32
    return %c0_i32, %c0_i32_0 : i32, i32
  }
  func.func @transform_2(%arg0: i32) -> (i32, i32) {
    %c0_i32 = arith.constant 0 : i32
    %c0_i32_0 = arith.constant 0 : i32
    %c0_i32_1 = arith.constant 0 : i32
    return %c0_i32, %c0_i32_0 : i32, i32
  }
  func.func @transform_3(%arg0: i32) -> (i32, i32) {
    %c0_i32 = arith.constant 0 : i32
    %c0_i32_0 = arith.constant 0 : i32
    %c0_i32_1 = arith.constant 0 : i32
    return %c0_i32, %c0_i32_0 : i32, i32
  }
  func.func @transform_4(%arg0: i32) -> (i32, i32) {
    %c0_i32 = arith.constant 0 : i32
    %c0_i32_0 = arith.constant 0 : i32
    %c0_i32_1 = arith.constant 0 : i32
    return %c0_i32, %c0_i32_0 : i32, i32
  }
  func.func @transform_5(%arg0: i32) -> (i32, i32) {
    %c0_i32 = arith.constant 0 : i32
    %c0_i32_0 = arith.constant 0 : i32
    %c0_i32_1 = arith.constant 0 : i32
    return %c0_i32, %c0_i32_0 : i32, i32
  }
  func.func @transform_6(%arg0: i32) -> (i32, i32) {
    %c0_i32 = arith.constant 0 : i32
    %c0_i32_0 = arith.constant 0 : i32
    %c0_i32_1 = arith.constant 0 : i32
    return %c0_i32, %c0_i32_0 : i32, i32
  }
  func.func @transform_7(%arg0: i32) -> (i32, i32) {
    %c0_i32 = arith.constant 0 : i32
    %c0_i32_0 = arith.constant 0 : i32
    %c0_i32_1 = arith.constant 0 : i32
    return %c0_i32, %c0_i32_0 : i32, i32
  }
  func.func @transform_8(%arg0: i32) -> (i32, i32) {
    %c0_i32 = arith.constant 0 : i32
    %c0_i32_0 = arith.constant 0 : i32
    %c0_i32_1 = arith.constant 0 : i32
    return %c0_i32, %c0_i32_0 : i32, i32
  }
  func.func @transform_9(%arg0: i32) -> (i32, i32) {
    %c0_i32 = arith.constant 0 : i32
    %c0_i32_0 = arith.constant 0 : i32
    %c0_i32_1 = arith.constant 0 : i32
    return %c0_i32, %c0_i32_0 : i32, i32
  }
  func.func @transform_10(%arg0: i32) -> (i32, i32) {
    %c0_i32 = arith.constant 0 : i32
    %c0_i32_0 = arith.constant 0 : i32
    %c0_i32_1 = arith.constant 0 : i32
    return %c0_i32, %c0_i32_0 : i32, i32
  }
  func.func @transform_11(%arg0: i32) -> (i32, i32) {
    %c0_i32 = arith.constant 0 : i32
    %c0_i32_0 = arith.constant 0 : i32
    %c0_i32_1 = arith.constant 0 : i32
    return %c0_i32, %c0_i32_0 : i32, i32
  }
  func.func @transform_12(%arg0: i32) -> (i32, i32) {
    %c0_i32 = arith.constant 0 : i32
    %c0_i32_0 = arith.constant 0 : i32
    %c0_i32_1 = arith.constant 0 : i32
    return %c0_i32, %c0_i32_0 : i32, i32
  }
  func.func @transform_13(%arg0: i32) -> (i32, i32) {
    %c0_i32 = arith.constant 0 : i32
    %c0_i32_0 = arith.constant 0 : i32
    %c0_i32_1 = arith.constant 0 : i32
    return %c0_i32, %c0_i32_0 : i32, i32
  }
  func.func @transform_14(%arg0: i32) -> (i32, i32) {
    %c0_i32 = arith.constant 0 : i32
    %c0_i32_0 = arith.constant 0 : i32
    %c0_i32_1 = arith.constant 0 : i32
    return %c0_i32, %c0_i32_0 : i32, i32
  }
  func.func @transform_15(%arg0: i32) -> (i32, i32) {
    %c0_i32 = arith.constant 0 : i32
    %c0_i32_0 = arith.constant 0 : i32
    return %arg0, %c0_i32 : i32, i32
  }
  func.func @transform_16(%arg0: i32) -> (i32, i32) {
    %c0_i32 = arith.constant 0 : i32
    %c0_i32_0 = arith.constant 0 : i32
    return %arg0, %c0_i32 : i32, i32
  }
}

</mosaic_0001>

<bundles_post_ra>
// kernel: tpu_custom_call.1
= control target key start
LH: loop header
LB: loop body
LE: loop exit
PB: predicated region body
PF: predicated region fallthrough
CT: control target
= control target key end

     0   :  { %s1012_s0 = inlined_call_operand.hbm [shape: f32[8,256], index: 0, kind: input, shape index: {}]   ;;  %s1013_s1 = inlined_call_operand.hbm [shape: f32[256,128], index: 1, kind: input, shape index: {}]   ;;  %s1014_s2 = inlined_call_operand.vmem [shape: f32[1,128], index: 2, kind: input, shape index: {}]   ;;  %s1015_s3 = inlined_call_operand.hbm [shape: f32[128,128], index: 3, kind: input, shape index: {}]   ;;  %s1016_s4 = inlined_call_operand.vmem [shape: f32[1,128], index: 4, kind: input, shape index: {}]   ;;  %s1017_s5 = inlined_call_operand.hbm [shape: f32[128,128], index: 5, kind: input, shape index: {}]   ;;  %s1018_s6 = inlined_call_operand.vmem [shape: f32[1,128], index: 6, kind: input, shape index: {}]   ;;  %s1019_s7 = inlined_call_operand.hbm [shape: f32[128,128], index: 7, kind: input, shape index: {}]   ;;  %s1020_s8 = inlined_call_operand.vmem [shape: f32[1,128], index: 8, kind: input, shape index: {}]   ;;  %s1021_s9 = inlined_call_operand.hbm [shape: f32[128,128], index: 9, kind: input, shape index: {}]   ;;  %s1022_s10 = inlined_call_operand.vmem [shape: f32[1,128], index: 10, kind: input, shape index: {}]   ;;  %s1023_s11 = inlined_call_operand.hbm [shape: f32[128,128], index: 11, kind: input, shape index: {}]   ;;  %s1024_s12 = inlined_call_operand.vmem [shape: f32[1,128], index: 12, kind: input, shape index: {}]   ;;  %s1025_s13 = inlined_call_operand.hbm [shape: f32[128,128], index: 13, kind: input, shape index: {}]   ;;  %s1026_s14 = inlined_call_operand.vmem [shape: f32[1,128], index: 14, kind: input, shape index: {}]   ;;  %s1027_s15 = inlined_call_operand.hbm [shape: f32[8,128], index: 15, kind: output, shape index: {0}]   ;;  %s1028_s16 = inlined_call_operand.hbm [shape: f32[8,128], index: 16, kind: output, shape index: {1}]  }
   0x1   :  { %1029 = sst [smem:[#allocation26_spill]] %s1012_s0 }
   0x2   :  { %22 = vsyncpa [#allocation3], 0 }
   0x3   :  { %23 = vsyncpa [#allocation6], 0 }
   0x4   :  { %24 = vsyncpa [#allocation9], 0 }
   0x5   :  { %25 = vsyncpa [#allocation12], 0 }
   0x6   :  { %26 = vsyncpa [#allocation15], 0 }
   0x7   :  { %27 = vsyncpa [#allocation4], 0  ;;  %s44_s23 = sshll.u32 %s1013_s1, 4  ;;  %s45_s23 = int_to_ptr.hbm [resolvable:$true] %s44_s23 }
   0x8   :  { %28 = vsyncpa [#allocation18], 0  ;;  %s843_s24 = smov [#allocation5]   ;;  %s74_s28 = sshll.u32 %s1017_s5, 4  ;;  %s75_s28 = int_to_ptr.hbm [resolvable:$true] %s74_s28 }
   0x9   :  { %s46_s25 = sshll.u32 %s843_s24, 4  ;;  %s844_s29 = smov 128   ;;  %s47_s25 = int_to_ptr.vmem [resolvable:$true] %s46_s25 }
   0xa   :  { %s845_s30 = smov 8   ;;  %s846_s0 = smov [#allocation8]  }
   0xb   :  { %52 = dma.hbm_to_vmem [thread:$0]  %s45_s23, 4096, %s47_s25, [#allocation6], %s844_s29, %s844_s29, %s845_s30  }
   0xc   :  { %s76_s17 = sshll.u32 %s846_s0, 4  ;;  %s104_s19 = sshll.u32 %s1021_s9, 4  ;;  %s77_s17 = int_to_ptr.vmem [resolvable:$true] %s76_s17  ;;  %s105_s19 = int_to_ptr.hbm [resolvable:$true] %s104_s19 }
   0xd   :  { %82 = dma.hbm_to_vmem [thread:$0]  %s75_s28, 2048, %s77_s17, [#allocation9], %s844_s29, %s844_s29, %s845_s30  }
   0xe   :  { %s1030_s21 = sld [smem:[#allocation26_spill]]  ;;  %s847_s24 = smov [#allocation11]  }
   0xf   :  { %s106_s26 = sshll.u32 %s847_s24, 4  ;;  %s848_s23 = smov [#allocation2]   ;;  %s107_s26 = int_to_ptr.vmem [resolvable:$true] %s106_s26 }
  0x10   :  { %112 = dma.hbm_to_vmem [thread:$0]  %s105_s19, 2048, %s107_s26, [#allocation12], %s844_s29, %s844_s29, %s845_s30  }
  0x11   :  { %s36_s9 = sshll.u32 %s848_s23, 4  ;;  %s59_s0 = sshll.u32 %s1015_s3, 4  ;;  %s37_s9 = int_to_ptr.vmem [resolvable:$true] %s36_s9  ;;  %s60_s0 = int_to_ptr.hbm [resolvable:$true] %s59_s0 }
  0x12   :  { %s89_s18 = sshll.u32 %s1019_s7, 4  ;;  %s849_s1 = smov [#allocation7]   ;;  %s90_s18 = int_to_ptr.hbm [resolvable:$true] %s89_s18 }
  0x13   :  { %s61_s5 = sshll.u32 %s849_s1, 4  ;;  %s850_s19 = smov [#allocation10]   ;;  %s62_s5 = int_to_ptr.vmem [resolvable:$true] %s61_s5 }
  0x14   :  { %s34_s22 = sshll.u32 %s1030_s21, 4  ;;  %s91_s20 = sshll.u32 %s850_s19, 4  ;;  %s35_s22 = int_to_ptr.hbm [resolvable:$true] %s34_s22  ;;  %s92_s20 = int_to_ptr.vmem [resolvable:$true] %s91_s20 }
  0x15   :  { %39 = dma.hbm_to_vmem [thread:$0]  %s35_s22, 256, %s37_s9, [#allocation3]  }
  0x16   :  { %67 = dma.hbm_to_vmem [thread:$0]  %s60_s0, 2048, %s62_s5, [#allocation6], %s844_s29, %s844_s29, %s845_s30  }
  0x17   :  { %s119_s3 = sshll.u32 %s1023_s11, 4  ;;  %s134_s26 = sshll.u32 %s1025_s13, 4  ;;  %s120_s3 = int_to_ptr.hbm [resolvable:$true] %s119_s3  ;;  %s135_s26 = int_to_ptr.hbm [resolvable:$true] %s134_s26 }
  0x18   :  { %97 = dma.hbm_to_vmem [thread:$0]  %s90_s18, 2048, %s92_s20, [#allocation9], %s844_s29, %s844_s29, %s845_s30  }
  0x19   :  { %s851_s23 = smov [#allocation13]   ;;  %s852_s25 = smov [#allocation14]  }
  0x1a   :  { %s121_s9 = sshll.u32 %s851_s23, 4  ;;  %s136_s11 = sshll.u32 %s852_s25, 4  ;;  %s122_s9 = int_to_ptr.vmem [resolvable:$true] %s121_s9  ;;  %s137_s11 = int_to_ptr.vmem [resolvable:$true] %s136_s11 }
  0x1b   :  { %127 = dma.hbm_to_vmem [thread:$0]  %s120_s3, 2048, %s122_s9, [#allocation12], %s844_s29, %s844_s29, %s845_s30  }
  0x1c   :  { %142 = dma.hbm_to_vmem [thread:$0]  %s135_s26, 2048, %s137_s11, [#allocation15], %s844_s29, %s844_s29, %s845_s30  }
  0x1d   :  { %829 = dma.done.wait [#allocation3], 256  }
  0x1e   :  { %830 = vsyncadd [#allocation3], 4294967040 }
  0x1f   :  { %831 = dma.done.wait [#allocation6], 6144  }
  0x20   :  { %832 = vsyncadd [#allocation6], 4294961152 }
  0x21   :  { %833 = dma.done.wait [#allocation9], 4096  }
  0x22   :  { %834 = vsyncadd [#allocation9], 4294963200 }
  0x23   :  { %835 = dma.done.wait [#allocation12], 4096  }
  0x24   :  { %836 = vsyncadd [#allocation12], 4294963200 }
  0x25   :  { %837 = dma.done.wait [#allocation15], 2048  }
  0x26   :  { %838 = vsyncadd [#allocation15], 4294965248  ;;  %v194_v0 = vld [vmem:[#allocation5 + $0x78] sm:$0xff]  ;;  %v193_v1 = vld [vmem:[#allocation5 + $0x70] sm:$0xff]  ;;  %s532_s20 = sshll.u32 %s1027_s15, 4  ;;  %s854_s21 = smov [#allocation17]   ;;  %s533_s20 = int_to_ptr.hbm [resolvable:$true] %s532_s20 }
  0x27   :  { %v210_v2 = vld [vmem:[#allocation5 + $0xf8] sm:$0xff]  ;;  %215 = vmatpush.msra.mxu0 %v194_v0  ;;  %v209_v3 = vld [vmem:[#allocation5 + $0xf0] sm:$0xff]  ;;  %v192_v4 = vld [vmem:[#allocation5 + $0x68] sm:$0xff]  ;;  %s541_s24 = sshll.u32 %s854_s21, 4  ;;  %s543_s22 = sshll.u32 %s1028_s16, 4  ;;  %s542_s24 = int_to_ptr.vmem [resolvable:$true] %s541_s24  ;;  %s544_s22 = int_to_ptr.hbm [resolvable:$true] %s543_s22 }
  0x28   :  { %235 = vmatpush.msra.mxu1 %v210_v2  ;;  %v208_v5 = vld [vmem:[#allocation5 + $0xe8] sm:$0xff]  ;;  %v191_v6 = vld [vmem:[#allocation5 + $0x60] sm:$0xff]  ;;  %v190_v8 = vld [vmem:[#allocation5 + $0x58] sm:$0xff] }
  0x29   :  { %216 = vmatpush.msra.mxu0 %v193_v1  ;;  %v207_v7 = vld [vmem:[#allocation5 + $0xe0] sm:$0xff]  ;;  %v206_v9 = vld [vmem:[#allocation5 + $0xd8] sm:$0xff]  ;;  %v189_v10 = vld [vmem:[#allocation5 + $0x50] sm:$0xff] }
  0x2a   :  { %236 = vmatpush.msra.mxu1 %v209_v3  ;;  %v205_v11 = vld [vmem:[#allocation5 + $0xd0] sm:$0xff]  ;;  %v188_v12 = vld [vmem:[#allocation5 + $0x48] sm:$0xff]  ;;  %v271_v14 = vld [vmem:[#allocation7 + $0x78] sm:$0xff] }
  0x2b   :  { %217 = vmatpush.msra.mxu0 %v192_v4  ;;  %v204_v13 = vld [vmem:[#allocation5 + $0xc8] sm:$0xff]  ;;  %v270_v15 = vld [vmem:[#allocation7 + $0x70] sm:$0xff]  ;;  %v187_v16 = vld [vmem:[#allocation5 + $0x40] sm:$0xff]  ;;  %276 = vmatpush.msra.mxu2 %v271_v14 }
  0x2c   :  { %237 = vmatpush.msra.mxu1 %v208_v5  ;;  %v203_v17 = vld [vmem:[#allocation5 + $0xc0] sm:$0xff]  ;;  %v186_v18 = vld [vmem:[#allocation5 + $0x38] sm:$0xff]  ;;  %v269_v19 = vld [vmem:[#allocation7 + $0x68] sm:$0xff] }
  0x2d   :  { %218 = vmatpush.msra.mxu0 %v191_v6  ;;  %v185_v20 = vld [vmem:[#allocation5 + $0x30] sm:$0xff]  ;;  %v202_v21 = vld [vmem:[#allocation5 + $0xb8] sm:$0xff]  ;;  %277 = vmatpush.msra.mxu2 %v270_v15  ;;  %v268_v23 = vld [vmem:[#allocation7 + $0x60] sm:$0xff] }
  0x2e   :  { %238 = vmatpush.msra.mxu1 %v207_v7  ;;  %v201_v22 = vld [vmem:[#allocation5 + $0xb0] sm:$0xff]  ;;  %v267_v24 = vld [vmem:[#allocation7 + $0x58] sm:$0xff]  ;;  %v184_v25 = vld [vmem:[#allocation5 + $0x28] sm:$0xff] }
  0x2f   :  { %219 = vmatpush.msra.mxu0 %v190_v8  ;;  %278 = vmatpush.msra.mxu2 %v269_v19  ;;  %v200_v26 = vld [vmem:[#allocation5 + $0xa8] sm:$0xff]  ;;  %v266_v27 = vld [vmem:[#allocation7 + $0x50] sm:$0xff]  ;;  %v183_v28 = vld [vmem:[#allocation5 + $0x20] sm:$0xff] }
  0x30   :  { %239 = vmatpush.msra.mxu1 %v206_v9  ;;  %v199_v29 = vld [vmem:[#allocation5 + $0xa0] sm:$0xff]  ;;  %v265_v30 = vld [vmem:[#allocation7 + $0x48] sm:$0xff]  ;;  %v182_v31 = vld [vmem:[#allocation5 + $0x18] sm:$0xff] }
  0x31   :  { %220 = vmatpush.msra.mxu0 %v189_v10  ;;  %279 = vmatpush.msra.mxu2 %v268_v23  ;;  %v198_v32 = vld [vmem:[#allocation5 + $0x98] sm:$0xff]  ;;  %v264_v33 = vld [vmem:[#allocation7 + $0x40] sm:$0xff]  ;;  %v181_v34 = vld [vmem:[#allocation5 + $0x10] sm:$0xff] }
  0x32   :  { %240 = vmatpush.msra.mxu1 %v205_v11  ;;  %v197_v35 = vld [vmem:[#allocation5 + $0x90] sm:$0xff]  ;;  %v263_v36 = vld [vmem:[#allocation7 + $0x38] sm:$0xff]  ;;  %v180_v37 = vld [vmem:[#allocation5 + $0x8] sm:$0xff] }
  0x33   :  { %221 = vmatpush.msra.mxu0 %v188_v12  ;;  %280 = vmatpush.msra.mxu2 %v267_v24  ;;  %v196_v38 = vld [vmem:[#allocation5 + $0x88] sm:$0xff]  ;;  %v262_v39 = vld [vmem:[#allocation7 + $0x30] sm:$0xff]  ;;  %v179_v40 = vld [vmem:[#allocation5] sm:$0xff] }
  0x34   :  { %241 = vmatpush.msra.mxu1 %v204_v13  ;;  %v195_v41 = vld [vmem:[#allocation5 + $0x80] sm:$0xff]  ;;  %v177_v42 = vld [vmem:[#allocation2] sm:$0xff]  ;;  %v178_v43 = vld [vmem:[#allocation2 + $0x8] sm:$0xff] }
  0x35   :  { %222 = vmatpush.msra.mxu0 %v187_v16  ;;  %281 = vmatpush.msra.mxu2 %v266_v27  ;;  %v261_v44 = vld [vmem:[#allocation7 + $0x28] sm:$0xff]  ;;  %v260_v45 = vld [vmem:[#allocation7 + $0x20] sm:$0xff]  ;;  %v259_v46 = vld [vmem:[#allocation7 + $0x18] sm:$0xff] }
  0x36   :  { %242 = vmatpush.msra.mxu1 %v203_v17  ;;  %v258_v47 = vld [vmem:[#allocation7 + $0x10] sm:$0xff]  ;;  %v257_v48 = vld [vmem:[#allocation7 + $0x8] sm:$0xff]  ;;  %v256_v49 = vld [vmem:[#allocation7] sm:$0xff] }
  0x37   :  { %223 = vmatpush.msra.mxu0 %v186_v18  ;;  %282 = vmatpush.msra.mxu2 %v265_v30  ;;  %v312_v50 = vld [vmem:[#allocation8 + $0x78] sm:$0xff]  ;;  %v311_v51 = vld [vmem:[#allocation8 + $0x70] sm:$0xff]  ;;  %v310_v52 = vld [vmem:[#allocation8 + $0x68] sm:$0xff] }
  0x38   :  { %243 = vmatpush.msra.mxu1 %v202_v21  ;;  %317 = vmatpush.msra.mxu3 %v312_v50  ;;  %v309_v53 = vld [vmem:[#allocation8 + $0x60] sm:$0xff]  ;;  %v308_v54 = vld [vmem:[#allocation8 + $0x58] sm:$0xff]  ;;  %v307_v55 = vld [vmem:[#allocation8 + $0x50] sm:$0xff] }
  0x39   :  { %224 = vmatpush.msra.mxu0 %v185_v20  ;;  %283 = vmatpush.msra.mxu2 %v264_v33  ;;  %v306_v56 = vld [vmem:[#allocation8 + $0x48] sm:$0xff]  ;;  %v305_v57 = vld [vmem:[#allocation8 + $0x40] sm:$0xff]  ;;  %v304_v58 = vld [vmem:[#allocation8 + $0x38] sm:$0xff] }
  0x3a   :  { %244 = vmatpush.msra.mxu1 %v201_v22  ;;  %318 = vmatpush.msra.mxu3 %v311_v51  ;;  %v303_v59 = vld [vmem:[#allocation8 + $0x30] sm:$0xff]  ;;  %v302_v60 = vld [vmem:[#allocation8 + $0x28] sm:$0xff]  ;;  %v301_v61 = vld [vmem:[#allocation8 + $0x20] sm:$0xff] }
  0x3b   :  { %225 = vmatpush.msra.mxu0 %v184_v25  ;;  %284 = vmatpush.msra.mxu2 %v263_v36  ;;  %v574_v62 = vld [vmem:[%s1014_s2] ss:$0 sm:$0xff]  ;;  %v300_v63 = vld [vmem:[#allocation8 + $0x18] sm:$0xff]  ;;  %v298_v6 = vld [vmem:[#allocation8 + $0x8] sm:$0xff] }
  0x3c   :  { %245 = vmatpush.msra.mxu1 %v200_v26  ;;  %319 = vmatpush.msra.mxu3 %v310_v52  ;;  %v299_v5 = vld [vmem:[#allocation8 + $0x10] sm:$0xff]  ;;  %v297_v7 = vld [vmem:[#allocation8] sm:$0xff]  ;;  %v352_v8 = vld [vmem:[#allocation10 + $0x78] sm:$0xff] }
  0x3d   :  { %226 = vmatpush.msra.mxu0 %v183_v28  ;;  %285 = vmatpush.msra.mxu2 %v262_v39  ;;  %v432_v9 = vld [vmem:[#allocation13 + $0x78] sm:$0xff]  ;;  %v351_v10 = vld [vmem:[#allocation10 + $0x70] sm:$0xff]  ;;  %v350_v12 = vld [vmem:[#allocation10 + $0x68] sm:$0xff] }
  0x3e   :  { %246 = vmatpush.msra.mxu1 %v199_v29  ;;  %320 = vmatpush.msra.mxu3 %v309_v53  ;;  %v431_v11 = vld [vmem:[#allocation13 + $0x70] sm:$0xff]  ;;  %v430_v13 = vld [vmem:[#allocation13 + $0x68] sm:$0xff]  ;;  %v349_v14 = vld [vmem:[#allocation10 + $0x60] sm:$0xff] }
  0x3f   :  { %227 = vmatpush.msra.mxu0 %v182_v31  ;;  %286 = vmatpush.msra.mxu2 %v261_v44  ;;  %v429_v15 = vld [vmem:[#allocation13 + $0x60] sm:$0xff]  ;;  %v348_v16 = vld [vmem:[#allocation10 + $0x58] sm:$0xff]  ;;  %v347_v18 = vld [vmem:[#allocation10 + $0x50] sm:$0xff] }
  0x40   :  { %247 = vmatpush.msra.mxu1 %v198_v32  ;;  %321 = vmatpush.msra.mxu3 %v308_v54  ;;  %v428_v17 = vld [vmem:[#allocation13 + $0x58] sm:$0xff]  ;;  %v427_v19 = vld [vmem:[#allocation13 + $0x50] sm:$0xff]  ;;  %v346_v20 = vld [vmem:[#allocation10 + $0x48] sm:$0xff] }
  0x41   :  { %228 = vmatpush.msra.mxu0 %v181_v34  ;;  %287 = vmatpush.msra.mxu2 %v260_v45  ;;  %v426_v21 = vld [vmem:[#allocation13 + $0x48] sm:$0xff]  ;;  %v345_v22 = vld [vmem:[#allocation10 + $0x40] sm:$0xff]  ;;  %v344_v24 = vld [vmem:[#allocation10 + $0x38] sm:$0xff] }
  0x42   :  { %248 = vmatpush.msra.mxu1 %v197_v35  ;;  %322 = vmatpush.msra.mxu3 %v307_v55  ;;  %v425_v23 = vld [vmem:[#allocation13 + $0x40] sm:$0xff]  ;;  %v424_v25 = vld [vmem:[#allocation13 + $0x38] sm:$0xff]  ;;  %v343_v26 = vld [vmem:[#allocation10 + $0x30] sm:$0xff] }
  0x43   :  { %229 = vmatpush.msra.mxu0 %v180_v37  ;;  %288 = vmatpush.msra.mxu2 %v259_v46  ;;  %v423_v27 = vld [vmem:[#allocation13 + $0x30] sm:$0xff]  ;;  %v342_v28 = vld [vmem:[#allocation10 + $0x28] sm:$0xff]  ;;  %v341_v30 = vld [vmem:[#allocation10 + $0x20] sm:$0xff] }
  0x44   :  { %249 = vmatpush.msra.mxu1 %v196_v38  ;;  %323 = vmatpush.msra.mxu3 %v306_v56  ;;  %v422_v29 = vld [vmem:[#allocation13 + $0x28] sm:$0xff]  ;;  %v421_v31 = vld [vmem:[#allocation13 + $0x20] sm:$0xff]  ;;  %v340_v32 = vld [vmem:[#allocation10 + $0x18] sm:$0xff] }
  0x45   :  { %230 = vmatpush.msra.mxu0 %v179_v40  ;;  %289 = vmatpush.msra.mxu2 %v258_v47  ;;  %v420_v33 = vld [vmem:[#allocation13 + $0x18] sm:$0xff]  ;;  %v575_v34 = vld [vmem:[%s1016_s4] ss:$0 sm:$0xff]  ;;  %v338_v40 = vld [vmem:[#allocation10 + $0x8] sm:$0xff] }
  0x46   :  { %250 = vmatpush.msra.mxu1 %v195_v41  ;;  %231 = vmatmul.f32.vlgmr.msra.gmra.mxu0 %v177_v42  ;;  %v339_v35 = vld [vmem:[#allocation10 + $0x10] sm:$0xff]  ;;  %v418_v41 = vld [vmem:[#allocation13 + $0x8] sm:$0xff]  ;;  %v337_v42 = vld [vmem:[#allocation10] sm:$0xff] }
  0x47   :  { %251 = vmatmul.f32.vlgmr.msra.gmra.mxu1 %v178_v43  ;;  %290 = vmatpush.msra.mxu2 %v257_v48  ;;  %v419_v36 = vld [vmem:[#allocation13 + $0x10] sm:$0xff]  ;;  %v417_v43 = vld [vmem:[#allocation13] sm:$0xff]  ;;  %v392_v44 = vld [vmem:[#allocation11 + $0x78] sm:$0xff] }
  0x48   :  { %324 = vmatpush.msra.mxu3 %v305_v57  ;;  %357 = vmatpush.msrb.mxu0 %v352_v8  ;;  %v391_v45 = vld [vmem:[#allocation11 + $0x70] sm:$0xff]  ;;  %v472_v46 = vld [vmem:[#allocation14 + $0x78] sm:$0xff]  ;;  %v390_v47 = vld [vmem:[#allocation11 + $0x68] sm:$0xff] }
  0x49   :  { %291 = vmatpush.msra.mxu2 %v256_v49  ;;  %397 = vmatpush.msrb.mxu1 %v392_v44  ;;  %v471_v48 = vld [vmem:[#allocation14 + $0x70] sm:$0xff]  ;;  %v470_v49 = vld [vmem:[#allocation14 + $0x68] sm:$0xff]  ;;  %v389_v50 = vld [vmem:[#allocation11 + $0x60] sm:$0xff] }
  0x4a   :  { %325 = vmatpush.msra.mxu3 %v304_v58  ;;  %358 = vmatpush.msrb.mxu0 %v351_v10  ;;  %v469_v51 = vld [vmem:[#allocation14 + $0x60] sm:$0xff]  ;;  %v388_v52 = vld [vmem:[#allocation11 + $0x58] sm:$0xff]  ;;  %v387_v54 = vld [vmem:[#allocation11 + $0x50] sm:$0xff] }
  0x4b   :  { %437 = vmatpush.msrb.mxu2 %v432_v9  ;;  %398 = vmatpush.msrb.mxu1 %v391_v45  ;;  %v468_v53 = vld [vmem:[#allocation14 + $0x58] sm:$0xff]  ;;  %v467_v55 = vld [vmem:[#allocation14 + $0x50] sm:$0xff]  ;;  %v386_v56 = vld [vmem:[#allocation11 + $0x48] sm:$0xff] }
  0x4c   :  { %326 = vmatpush.msra.mxu3 %v303_v59  ;;  %359 = vmatpush.msrb.mxu0 %v350_v12  ;;  %v466_v57 = vld [vmem:[#allocation14 + $0x48] sm:$0xff]  ;;  %v385_v58 = vld [vmem:[#allocation11 + $0x40] sm:$0xff]  ;;  %v459_v12 = vld [vmem:[#allocation14 + $0x10] sm:$0xff] }
  0x4d   :  { %438 = vmatpush.msrb.mxu2 %v431_v11  ;;  %399 = vmatpush.msrb.mxu1 %v390_v47  ;;  %v465_v59 = vld [vmem:[#allocation14 + $0x40] sm:$0xff]  ;;  %v378_v8 = vld [vmem:[#allocation11 + $0x8] sm:$0xff]  ;;  %v460_v11 = vld [vmem:[#allocation14 + $0x18] sm:$0xff] }
  0x4e   :  { %327 = vmatpush.msra.mxu3 %v302_v60  ;;  %360 = vmatpush.msrb.mxu0 %v349_v14  ;;  %v384_v60 = vld [vmem:[#allocation11 + $0x38] sm:$0xff]  ;;  %v461_v9 = vld [vmem:[#allocation14 + $0x20] sm:$0xff] }
  0x4f   :  { %439 = vmatpush.msrb.mxu2 %v430_v13  ;;  %400 = vmatpush.msrb.mxu1 %v389_v50  ;;  %v377_v10 = vld [vmem:[#allocation11] sm:$0xff]  ;;  %v458_v13 = vld [vmem:[#allocation14 + $0x8] sm:$0xff] }
  0x50   :  { %328 = vmatpush.msra.mxu3 %v301_v61  ;;  %361 = vmatpush.msrb.mxu0 %v348_v16  ;;  %v464_v61 = vld [vmem:[#allocation14 + $0x38] sm:$0xff]  ;;  %v457_v14 = vld [vmem:[#allocation14] sm:$0xff] }
  0x51   :  { %440 = vmatpush.msrb.mxu2 %v429_v15  ;;  %401 = vmatpush.msrb.mxu1 %v388_v52  ;;  %v577_v15 = vld [vmem:[%s1020_s8] ss:$0 sm:$0xff] }
  0x52   :  { %329 = vmatpush.msra.mxu3 %v300_v63  ;;  %362 = vmatpush.msrb.mxu0 %v347_v18  ;;  %v463_v63 = vld [vmem:[#allocation14 + $0x30] sm:$0xff] }
  0x53   :  { %441 = vmatpush.msrb.mxu2 %v428_v17  ;;  %402 = vmatpush.msrb.mxu1 %v387_v54  ;;  %v578_v18 = vld [vmem:[%s1024_s12] ss:$0 sm:$0xff] }
  0x54   :  { %330 = vmatpush.msra.mxu3 %v299_v5  ;;  %363 = vmatpush.msrb.mxu0 %v346_v20  ;;  %v576_v5 = vld [vmem:[%s1018_s6] ss:$0 sm:$0xff] }
  0x55   :  { %442 = vmatpush.msrb.mxu2 %v427_v19  ;;  %403 = vmatpush.msrb.mxu1 %v386_v56 }
  0x56   :  { %331 = vmatpush.msra.mxu3 %v298_v6  ;;  %364 = vmatpush.msrb.mxu0 %v345_v22  ;;  %v580_v22 = vld [vmem:[%s1026_s14] ss:$0 sm:$0xff] }
  0x57   :  { %443 = vmatpush.msrb.mxu2 %v426_v21  ;;  %404 = vmatpush.msrb.mxu1 %v385_v58  ;;  %v497_v21 = vlaneseq }
  0x58   :  { %332 = vmatpush.msra.mxu3 %v297_v7  ;;  %365 = vmatpush.msrb.mxu0 %v344_v24 }
  0x59   :  { %444 = vmatpush.msrb.mxu2 %v425_v23  ;;  %405 = vmatpush.msrb.mxu1 %v384_v60  ;;  %v498_v23 = vand.u32 127, %v497_v21 }
  0x5a   :  { %366 = vmatpush.msrb.mxu0 %v343_v26  ;;  %477 = vmatpush.msrb.mxu3 %v472_v46  ;;  %v579_v26 = vld [vmem:[%s1022_s10] ss:$0 sm:$0xff]  ;;  %s853_s10 = smov [#allocation16]  }
  0x5b   :  { %445 = vmatpush.msrb.mxu2 %v424_v25  ;;  %vm499_vm0 = vcmp.lt.s32.totalorder %v498_v23, 65  ;;  %vm512_vm1 = vcmp.lt.s32.totalorder %v498_v23, 3  ;;  %s530_s12 = sshll.u32 %s853_s10, 4  ;;  %s531_s12 = int_to_ptr.vmem [resolvable:$true] %s530_s12 }
  0x5c   :  { %367 = vmatpush.msrb.mxu0 %v342_v28  ;;  %478 = vmatpush.msrb.mxu3 %v471_v48 }
  0x5d   :  { %446 = vmatpush.msrb.mxu2 %v423_v27 }
  0x5e   :  { %368 = vmatpush.msrb.mxu0 %v341_v30  ;;  %479 = vmatpush.msrb.mxu3 %v470_v49 }
  0x5f   :  { %447 = vmatpush.msrb.mxu2 %v422_v29 }
  0x60   :  { %369 = vmatpush.msrb.mxu0 %v340_v32  ;;  %480 = vmatpush.msrb.mxu3 %v469_v51 }
  0x61   :  { %448 = vmatpush.msrb.mxu2 %v421_v31 }
  0x62   :  { %370 = vmatpush.msrb.mxu0 %v339_v35  ;;  %481 = vmatpush.msrb.mxu3 %v468_v53 }
  0x63   :  { %449 = vmatpush.msrb.mxu2 %v420_v33 }
  0x64   :  { %371 = vmatpush.msrb.mxu0 %v338_v40  ;;  %482 = vmatpush.msrb.mxu3 %v467_v55 }
  0x65   :  { %450 = vmatpush.msrb.mxu2 %v419_v36 }
  0x66   :  { %372 = vmatpush.msrb.mxu0 %v337_v42  ;;  %483 = vmatpush.msrb.mxu3 %v466_v57 }
  0x67   :  { %451 = vmatpush.msrb.mxu2 %v418_v41 }
  0x68   :  { %484 = vmatpush.msrb.mxu3 %v465_v59 }
  0x69   :  { %452 = vmatpush.msrb.mxu2 %v417_v43 }
  0x6a   :  { %485 = vmatpush.msrb.mxu3 %v464_v61 }
  0x6c   :  { %486 = vmatpush.msrb.mxu3 %v463_v63 }
  0xc3   :  { %v232_v0 = vpop.f32.mrf.mxu0 }
  0xc4   :  { %v252_v1 = vpop.f32.mrf.mxu1  ;;  %v233_v2 = vadd.f32 %v574_v62, %v232_v0  ;;  %v383_v62 = vld [vmem:[#allocation11 + $0x30] sm:$0xff]  ;;  %v382_v0 = vld [vmem:[#allocation11 + $0x28] sm:$0xff] }
  0xc5   :  { %406 = vmatpush.msrb.mxu1 %v383_v62 }
  0xc6   :  { %v253_v3 = vadd.f32 %v252_v1, %v233_v2  ;;  %v462_v1 = vld [vmem:[#allocation14 + $0x28] sm:$0xff]  ;;  %v381_v2 = vld [vmem:[#allocation11 + $0x20] sm:$0xff] }
  0xc7   :  { %407 = vmatpush.msrb.mxu1 %v382_v0  ;;  %487 = vmatpush.msrb.mxu3 %v462_v1 }
  0xc8   :  { %v255_v4 = vmax.f32 %v253_v3, 0.0  ;;  %v380_v3 = vld [vmem:[#allocation11 + $0x18] sm:$0xff] }
  0xc9   :  { %408 = vmatpush.msrb.mxu1 %v381_v2  ;;  %488 = vmatpush.msrb.mxu3 %v461_v9 }
  0xca   :  { %292 = vmatmul.f32.vlgmr.msra.gmra.mxu2 %v255_v4  ;;  %v379_v4 = vld [vmem:[#allocation11 + $0x10] sm:$0xff] }
  0xcb   :  { %409 = vmatpush.msrb.mxu1 %v380_v3  ;;  %489 = vmatpush.msrb.mxu3 %v460_v11 }
  0xcd   :  { %410 = vmatpush.msrb.mxu1 %v379_v4  ;;  %490 = vmatpush.msrb.mxu3 %v459_v12 }
  0xcf   :  { %411 = vmatpush.msrb.mxu1 %v378_v8  ;;  %491 = vmatpush.msrb.mxu3 %v458_v13 }
  0xd1   :  { %412 = vmatpush.msrb.mxu1 %v377_v10  ;;  %492 = vmatpush.msrb.mxu3 %v457_v14 }
 0x14d   :  { %v293_v37 = vpop.f32.mrf.mxu2 }
 0x14e   :  { %v294_v38 = vadd.f32 %v575_v34, %v293_v37 }
 0x150   :  { %v296_v39 = vmax.f32 %v294_v38, 0.0 }
 0x152   :  { %333 = vmatmul.f32.vlgmr.msra.gmra.mxu3 %v296_v39 }
 0x1d5   :  { %v334_v6 = vpop.f32.mrf.mxu3 }
 0x1d6   :  { %v335_v7 = vadd.f32 %v576_v5, %v334_v6 }
 0x1d8   :  { %373 = vmatmul.f32.vlgmr.msrb.gmra.mxu0 %v335_v7  ;;  %453 = vmatmul.f32.vlgmr.msrb.gmra.mxu2 %v335_v7 }
 0x255   :  { %v374_v16 = vpop.f32.mrf.mxu0 }
 0x256   :  { %v375_v17 = vadd.f32 %v577_v15, %v374_v16 }
 0x258   :  { %413 = vmatmul.f32.vlgmr.msrb.gmra.mxu1 %v375_v17 }
 0x25b   :  { %v454_v19 = vpop.f32.mrf.mxu2 }
 0x25c   :  { %v455_v20 = vadd.f32 %v578_v18, %v454_v19 }
 0x25e   :  { %493 = vmatmul.f32.vlgmr.msrb.gmra.mxu3 %v455_v20 }
 0x2d5   :  { %v414_v28 = vpop.f32.mrf.mxu1 }
 0x2d6   :  { %v415_v29 = vadd.f32 %v579_v26, %v414_v28 }
 0x2d8   :  { %v513_v30 = vsel %vm512_vm1, %v415_v29, -inf }
 0x2e1   :  { %v494_v24 = vpop.f32.mrf.mxu3 }
 0x2e2   :  { %v495_v25 = vadd.f32 %v580_v22, %v494_v24 }
 0x2e4   :  { %v500_v27 = vsel %vm499_vm0, %v495_v25, -inf }
 0x2e5   :  { %501 = vmax.xlane.f32.xlu0 %v500_v27 }
 0x2ed   :  { %514 = vmax.xlane.f32.xlu0 %v513_v30 }
 0x358   :  { %v502_v31 = vpop.xlane.xlu0 %501 }
 0x359   :  { %v503_v32 = vsub.f32 %v500_v27, %v502_v31 }
 0x35b   :  { %v504_v33 = vmul.f32 1.442695, %v503_v32 }
 0x35d   :  { %581 = vpow2.f32 %v504_v33 }
 0x360   :  { %v515_v34 = vpop.xlane.xlu0 %514 }
 0x361   :  { %v516_v35 = vsub.f32 %v513_v30, %v515_v34 }
 0x363   :  { %v582_v36 = vpop.eup %581  ;;  %v517_v37 = vmul.f32 1.442695, %v516_v35 }
 0x364   :  { %506 = vadd.xlane.f32.xlu1 %v582_v36 }
 0x365   :  { %583 = vpow2.f32 %v517_v37 }
 0x36b   :  { %v584_v38 = vpop.eup %583 }
 0x36c   :  { %519 = vadd.xlane.f32.xlu1 %v584_v38 }
 0x3d7   :  { %v507_v39 = vpop.xlane.xlu1 %506 }
 0x3d8   :  { %585 = vlog2.f32 %v507_v39 }
 0x3de   :  { %v586_v40 = vpop.eup %585 }
 0x3df   :  { %v509_v41 = vmul.f32 0.6931472, %v586_v40  ;;  %v520_v42 = vpop.xlane.xlu1 %519 }
 0x3e0   :  { %587 = vlog2.f32 %v520_v42 }
 0x3e1   :  { %v510_v43 = vsub.f32 %v503_v32, %v509_v41 }
 0x3e3   :  { %511 = vst [vmem:[#allocation16] sm:$0xff] %v510_v43 }
 0x3e4   :  { %535 = dma.vmem_to_hbm [thread:$0]  %s531_s12, 128, %s533_s20, [#allocation4]  }
 0x3e6   :  { %v588_v44 = vpop.eup %587 }
 0x3e7   :  { %v522_v45 = vmul.f32 0.6931472, %v588_v44 }
 0x3e9   :  { %v523_v46 = vsub.f32 %v516_v35, %v522_v45 }
 0x3eb   :  { %524 = vst [vmem:[#allocation17] sm:$0xff] %v523_v46 }
 0x3ec   :  { %546 = dma.vmem_to_hbm [thread:$0]  %s542_s24, 128, %s544_s22, [#allocation18]  }
 0x3ed   :  { %839 = dma.done.wait [#allocation4], 128  }
 0x3ee   :  { %840 = vsyncadd [#allocation4], 4294967168 }
 0x3ef   :  { %841 = dma.done.wait [#allocation18], 128  }
 0x3f0   :  { %842 = vsyncadd [#allocation18], 4294967168 }
 0x3f1   :  { %555 = vsyncpa [#allocation3], 1 }
 0x3f2   :  { %556 = vsyncpa [#allocation6], 1 }
 0x3f3   :  { %557 = vsyncpa [#allocation9], 1 }
 0x3f4   :  { %558 = vsyncpa [#allocation12], 1 }
 0x3f5   :  { %559 = vsyncpa [#allocation15], 1 }
 0x3f6   :  { %560 = vsyncpa [#allocation4], 1 }
 0x3f7   :  { %561 = vsyncpa [#allocation18], 1 }

</bundles_post_ra>
